<compile_context>
chip_gen: v7x
topology: tpu7x:2x2x1
jax: 0.10.0
libtpu: 0.0.40
codegen_flags: <defaults>
</compile_context>

<pallas_src>
import functools
import math

import jax
import jax.numpy as jnp
from jax.experimental import pallas as pl
from jax.experimental.pallas import tpu as pltpu


def _round_up(x, m):
    return (x + m - 1) // m * m


# ---------------------------------------------------------------------------
# Kernel 1: mask is None.  Packed, lane-dense, batch-invariant output (1, lp, 2F),
# lp = ceil(L/2).  Column c of packed row p encodes (position 2p + c // F,
# feature c % F):
#   angle[p, c] = p_global * coef2[c] + bias[c]
#   coef2[c] = 2 * s / dim_t[c % F]                (s folds the static normalize)
#   bias[c]  = (c // F + 1) * s / dim_t[c % F] + (pi/2 if (c % F) odd else 0)
# The grid offset t * tile_p is folded into a per-block bias row (one (1, 2F) op
# per grid step), leaving mul + add + sin per element.
# ---------------------------------------------------------------------------
def _sinpos_nomask_kernel(coef2_ref, bias_ref, out_ref, *, tile_p):
    t = pl.program_id(0)
    bias_tile = bias_ref[...] + (t * tile_p).astype(jnp.float32) * coef2_ref[...]
    p = jax.lax.broadcasted_iota(jnp.int32, out_ref.shape, dimension=1)
    out_ref[...] = jnp.sin(p.astype(jnp.float32) * coef2_ref[...] + bias_tile)


# ---------------------------------------------------------------------------
# Kernel 2: explicit mask.  embed (cumsum of ~mask, optionally normalized) is
# precomputed in the wrapper and fed as even/odd position columns so the output
# block is lane-dense (last dim 2F = 128 for F = 64):
#   angle[b, r, c] = e_even[b, r] * coef_lo[c] + e_odd[b, r] * coef_hi[c] + phase2[c]
# with coef_lo zero on the upper half and coef_hi zero on the lower half.
# ---------------------------------------------------------------------------
def _sinpos_masked_kernel(e0_ref, e1_ref, coef_lo_ref, coef_hi_ref, phase2_ref,
                          out_ref):
    angle = (e0_ref[...] * coef_lo_ref[...]
             + e1_ref[...] * coef_hi_ref[...]
             + phase2_ref[...])
    out_ref[...] = jnp.sin(angle)


def sinusoid_positional_embedding(x, mask=None, *, num_pos_feats=64,
                                  temperature=10000, normalize=False,
                                  scale=None):
    """Pallas TPU implementation of SinusoidPositionalEmbedding.forward."""
    if scale is not None and normalize is False:
        raise ValueError("normalize should be True if scale is passed")
    if scale is None:
        scale = 2 * math.pi
    if num_pos_feats % 2 != 0:
        raise ValueError("num_pos_feats must be even")

    B, L = x.shape
    F = num_pos_feats
    eps = 1e-6
    lp = -(-L // 2)                                 # number of packed position pairs

    # 1 / dim_t  with  dim_t = temperature ** (2 * (i // 2) / F)
    i = jnp.arange(F, dtype=jnp.float32)
    inv_dim_t = jnp.power(jnp.float32(temperature), -2.0 * jnp.floor(i / 2.0) / F)
    # cos(x) = sin(x + pi/2): phase offset for odd feature indices.
    phase = jnp.where(jnp.arange(F) % 2 == 1,
                      jnp.float32(math.pi / 2.0), jnp.float32(0.0))
    phase2 = jnp.concatenate([phase, phase]).reshape(1, 2 * F)

    if mask is None:
        # embed[l] = l + 1; with normalize the denominator is the static value L.
        s = jnp.float32(scale) / (L + eps) if normalize else jnp.float32(1.0)
        coef = s * inv_dim_t                                            # (F,)
        coef_full = jnp.concatenate([coef, coef]).reshape(1, 2 * F)
        coef2 = 2.0 * coef_full                                         # (1, 2F)
        colpos = (jnp.arange(2 * F) // F).astype(jnp.float32).reshape(1, 2 * F)
        bias = (colpos + 1.0) * coef_full + phase2                      # (1, 2F)

        # Up to 1 MiB output blocks; keep ~4 grid steps when large (v7x megacore).
        tile_p = max(8, min(2048, _round_up(pl.cdiv(lp, 4), 8), _round_up(lp, 8)))
        n_tiles = pl.cdiv(lp, tile_p)
        elems = lp * 2 * F

        kernel = functools.partial(_sinpos_nomask_kernel, tile_p=tile_p)
        out_packed = pl.pallas_call(
            kernel,
            out_shape=jax.ShapeDtypeStruct((1, lp, 2 * F), jnp.float32),
            grid=(n_tiles,),
            in_specs=[
                pl.BlockSpec((1, 2 * F), lambda t: (0, 0)),
                pl.BlockSpec((1, 2 * F), lambda t: (0, 0)),
            ],
            out_specs=pl.BlockSpec((1, tile_p, 2 * F), lambda t: (0, t, 0)),
            compiler_params=pltpu.CompilerParams(
                dimension_semantics=("parallel",)),
            cost_estimate=pl.CostEstimate(flops=3 * elems, transcendentals=elems,
                                          bytes_accessed=4 * elems),
        )(coef2, bias)
        # Free, contiguous un-packing: (1, lp, 2F) -> (1, 2*lp, F) -> (1, L, F)
        slab = out_packed.reshape(1, 2 * lp, F)
        if 2 * lp != L:
            slab = slab[:, :L, :]
        # Batch-invariant: broadcast (typically fuses into the consumer).
        return jnp.broadcast_to(slab, (B, L, F))

    # ---- explicit mask path -------------------------------------------------
    not_mask = jnp.logical_not(mask).astype(jnp.float32)               # (B, L)
    embed = jnp.cumsum(not_mask, axis=1)                               # cheap (B, L)
    if normalize:
        embed = embed * (jnp.float32(scale) / (embed[:, -1:] + eps))
    if 2 * lp != L:                                                    # pad to even L
        embed = jnp.pad(embed, ((0, 0), (0, 2 * lp - L)))
    e0 = embed[:, 0::2].reshape(B, lp, 1)                              # even positions
    e1 = embed[:, 1::2].reshape(B, lp, 1)                              # odd positions

    zeros = jnp.zeros((F,), jnp.float32)
    coef_lo = jnp.concatenate([inv_dim_t, zeros]).reshape(1, 2 * F)
    coef_hi = jnp.concatenate([zeros, inv_dim_t]).reshape(1, 2 * F)

    tile_r = max(8, min(2048, _round_up(pl.cdiv(lp, 2), 8), _round_up(lp, 8)))
    n_tiles = pl.cdiv(lp, tile_r)
    elems = B * lp * 2 * F

    out_packed = pl.pallas_call(
        _sinpos_masked_kernel,
        out_shape=jax.ShapeDtypeStruct((B, lp, 2 * F), jnp.float32),
        grid=(B, n_tiles),
        in_specs=[
            pl.BlockSpec((1, tile_r, 1), lambda b, t: (b, t, 0)),
            pl.BlockSpec((1, tile_r, 1), lambda b, t: (b, t, 0)),
            pl.BlockSpec((1, 2 * F), lambda b, t: (0, 0)),
            pl.BlockSpec((1, 2 * F), lambda b, t: (0, 0)),
            pl.BlockSpec((1, 2 * F), lambda b, t: (0, 0)),
        ],
        out_specs=pl.BlockSpec((1, tile_r, 2 * F), lambda b, t: (b, t, 0)),
        compiler_params=pltpu.CompilerParams(
            dimension_semantics=("parallel", "parallel")),
        cost_estimate=pl.CostEstimate(flops=5 * elems, transcendentals=elems,
                                      bytes_accessed=4 * elems + 4 * B * L),
    )(e0, e1, coef_lo, coef_hi, phase2)
    out = out_packed.reshape(B, 2 * lp, F)
    if 2 * lp != L:
        out = out[:, :L, :]
    return out


def _reference(x, mask=None, *, num_pos_feats=64, temperature=10000,
               normalize=False, scale=None):
    """Pure-JAX reference mirroring the PyTorch code (for correctness check)."""
    if scale is None:
        scale = 2 * math.pi
    if mask is None:
        mask = jnp.zeros(x.shape, dtype=bool)
    not_mask = (mask == False)  # noqa: E712
    embed = jnp.cumsum(not_mask.astype(jnp.float32), axis=1)
    if normalize:
        eps = 1e-6
        embed = embed / (embed[:, -1:] + eps) * scale
    dim_t = jnp.arange(num_pos_feats, dtype=jnp.float32)
    dim_t = temperature ** (2.0 * jnp.floor(dim_t / 2.0) / num_pos_feats)
    pos = embed[:, :, None] / dim_t
    stacked = jnp.stack((jnp.sin(pos[:, :, 0::2]), jnp.cos(pos[:, :, 1::2])),
                        axis=-1)
    return stacked.reshape(pos.shape[0], pos.shape[1], -1)


if __name__ == "__main__":
    key = jax.random.PRNGKey(0)
    B, L, F = 2, 8, 64
    x = jax.random.normal(key, (B, L), dtype=jnp.float32)   # only the shape is used

    # Path 1: mask=None (default, batch-invariant lane-dense packed kernel).
    out = sinusoid_positional_embedding(x, mask=None, num_pos_feats=F)
    out = jax.block_until_ready(out)
    ref = _reference(x, mask=None, num_pos_feats=F)
    assert out.shape == (B, L, F)
    assert jnp.allclose(out, ref, atol=1e-5, rtol=1e-5), "mask=None mismatch"

    # Path 2: explicit mask + normalize (lane-dense packed output).
    mask = jax.random.bernoulli(jax.random.PRNGKey(1), 0.3, (B, L))
    out_m = sinusoid_positional_embedding(x, mask=mask, num_pos_feats=F,
                                          normalize=True)
    out_m = jax.block_until_ready(out_m)
    ref_m = _reference(x, mask=mask, num_pos_feats=F, normalize=True)
    assert out_m.shape == (B, L, F)
    assert jnp.allclose(out_m, ref_m, atol=1e-5, rtol=1e-5), "masked mismatch"

    # Odd / non-divisible length exercises Pallas boundary-block clipping.
    L2 = 19
    x2 = jax.random.normal(jax.random.PRNGKey(2), (B, L2), dtype=jnp.float32)
    out2 = jax.block_until_ready(
        sinusoid_positional_embedding(x2, mask=None, num_pos_feats=F,
                                      normalize=True))
    ref2 = _reference(x2, mask=None, num_pos_feats=F, normalize=True)
    assert out2.shape == (B, L2, F)
    assert jnp.allclose(out2, ref2, atol=1e-5, rtol=1e-5), "odd-L mask=None mismatch"

    mask2 = jax.random.bernoulli(jax.random.PRNGKey(3), 0.3, (B, L2))
    out2_m = jax.block_until_ready(
        sinusoid_positional_embedding(x2, mask=mask2, num_pos_feats=F,
                                      normalize=True))
    ref2_m = _reference(x2, mask=mask2, num_pos_feats=F, normalize=True)
    assert out2_m.shape == (B, L2, F)
    assert jnp.allclose(out2_m, ref2_m, atol=1e-5, rtol=1e-5), "odd-L masked mismatch"

    print("KERNEL_OK")
</pallas_src>

<mosaic_0001>
module attributes {stable_mosaic.version = 11 : i64} {
  func.func @_sinpos_nomask_kernel(%arg0: i32, %arg1: memref<1x128xf32, #tpu.memory_space<vmem>>, %arg2: memref<1x128xf32, #tpu.memory_space<vmem>>, %arg3: memref<1x8x128xf32, #tpu.memory_space<vmem>>) attributes {dimension_semantics = [#tpu.dimension_semantics<parallel>], iteration_bounds = array<i64: 1>, scalar_prefetch = 0 : i64, scratch_operands = 0 : i64, tpu.core_type = #tpu.core_type<tc>, window_params = [{pipeline_mode = #tpu.pipeline_mode<synchronous>, transform_indices = @transform_0, window_bounds = array<i64: 1, 128>}, {pipeline_mode = #tpu.pipeline_mode<synchronous>, transform_indices = @transform_1, window_bounds = array<i64: 1, 128>}, {transform_indices = @transform_2, window_bounds = array<i64: 1, 8, 128>}]} {
    %c0 = arith.constant 0 : index
    %c0_0 = arith.constant 0 : index
    %0 = vector.load %arg2[%c0, %c0_0] : memref<1x128xf32, #tpu.memory_space<vmem>>, vector<1x128xf32>
    %c8_i32 = arith.constant 8 : i32
    %1 = arith.muli %arg0, %c8_i32 : i32
    %2 = arith.sitofp %1 : i32 to f32
    %c0_1 = arith.constant 0 : index
    %c0_2 = arith.constant 0 : index
    %3 = vector.load %arg1[%c0_1, %c0_2] : memref<1x128xf32, #tpu.memory_space<vmem>>, vector<1x128xf32>
    %4 = vector.broadcast %2 : f32 to vector<1x128xf32>
    %5 = arith.mulf %4, %3 : vector<1x128xf32>
    %6 = arith.addf %0, %5 : vector<1x128xf32>
    %7 = tpu.iota {dimensions = array<i32: 1>} : vector<1x8x128xi32>
    %8 = arith.sitofp %7 : vector<1x8x128xi32> to vector<1x8x128xf32>
    %c0_3 = arith.constant 0 : index
    %c0_4 = arith.constant 0 : index
    %9 = vector.load %arg1[%c0_3, %c0_4] : memref<1x128xf32, #tpu.memory_space<vmem>>, vector<1x128xf32>
    %10 = vector.shape_cast %9 : vector<1x128xf32> to vector<1x1x128xf32>
    %11 = vector.broadcast %10 : vector<1x1x128xf32> to vector<1x8x128xf32>
    %12 = arith.mulf %8, %11 : vector<1x8x128xf32>
    %13 = vector.shape_cast %6 : vector<1x128xf32> to vector<1x1x128xf32>
    %14 = vector.broadcast %13 : vector<1x1x128xf32> to vector<1x8x128xf32>
    %15 = arith.addf %12, %14 : vector<1x8x128xf32>
    %16 = math.sin %15 : vector<1x8x128xf32>
    %c0_5 = arith.constant 0 : index
    %c0_6 = arith.constant 0 : index
    %c0_7 = arith.constant 0 : index
    %17 = vector.load %arg3[%c0_5, %c0_6, %c0_7] : memref<1x8x128xf32, #tpu.memory_space<vmem>>, vector<1x8x128xf32>
    tpu.vector_store %arg3[%c0_5, %c0_6, %c0_7], %16 {strides = array<i32>} : memref<1x8x128xf32, #tpu.memory_space<vmem>>, vector<1x8x128xf32>,
    return
  }
  func.func @transform_0(%arg0: i32) -> (i32, i32) {
    %c0_i32 = arith.constant 0 : i32
    %c0_i32_0 = arith.constant 0 : i32
    %c0_i32_1 = arith.constant 0 : i32
    return %c0_i32, %c0_i32_0 : i32, i32
  }
  func.func @transform_1(%arg0: i32) -> (i32, i32) {
    %c0_i32 = arith.constant 0 : i32
    %c0_i32_0 = arith.constant 0 : i32
    %c0_i32_1 = arith.constant 0 : i32
    return %c0_i32, %c0_i32_0 : i32, i32
  }
  func.func @transform_2(%arg0: i32) -> (i32, i32, i32) {
    %c0_i32 = arith.constant 0 : i32
    %c0_i32_0 = arith.constant 0 : i32
    %c0_i32_1 = arith.constant 0 : i32
    return %c0_i32, %arg0, %c0_i32_0 : i32, i32, i32
  }
}

</mosaic_0001>

<bundles_post_ra>
// kernel: tpu_custom_call.1
= control target key start
LH: loop header
LB: loop body
LE: loop exit
PB: predicated region body
PF: predicated region fallthrough
CT: control target
= control target key end

     0   :  { %7 = vsyncpa [#allocation3], 0  ;;  %s313_s0 = inlined_call_operand.hbm [shape: f32[1,128], index: 0, kind: input, shape index: {}]   ;;  %s314_s1 = inlined_call_operand.vmem [shape: f32[1,128], index: 1, kind: input, shape index: {}]   ;;  %s315_s2 = inlined_call_operand.hbm [shape: f32[1,4,128], index: 2, kind: output, shape index: {}]  }
   0x1   :  { %8 = vsyncpa [#allocation4], 0  ;;  %s240_s9 = smov [#allocation2]   ;;  %s192_s13 = scalar_lea.hbm %s313_s0, 16 }
   0x2   :  { %s15_s10 = sshll.u32 %s240_s9, 4  ;;  %p193_p0 = scmp.ne.s32.totalorder %s313_s0, %s192_s13  ;;  %s16_s10 = int_to_ptr.vmem [resolvable:$true] %s15_s10 }
   0x3   :  { %p196_p1 = scmp.lt.u32.totalorder %s192_s13, %s313_s0 }
   0x5   :  { %p198_p2 = pnand %p196_p1, %p193_p0 }
   0x7   :  { %201 = shalt.err (!%p198_p2)
}
   0x8   :  { %s202_s18 = scalar_lea.vmem %s16_s10, 16  ;;  %s206_s19 = scalar_lea.vmem %s16_s10, 32 }
   0x9   :  { %p203_p3 = scmp.ne.s32.totalorder %s16_s10, %s202_s18  ;;  %p207_p4 = scmp.lt.s32.totalorder %s16_s10, %s16_s10 }
   0xa   :  { %p208_p5 = scmp.lt.s32.totalorder %s206_s19, %s202_s18 }
   0xc   :  { %p209_p6 = por %p208_p5, %p207_p4 }
   0xe   :  { %p210_p7 = pnand %p209_p6, %p203_p3 }
  0x10   :  { %213 = shalt.err (!%p210_p7)
}
  0x11   :  { %18 = dma.hbm_to_vmem [thread:$0]  %s313_s0, 16, %s16_s10, [#allocation3]  }
  0x12   :  { %236 = dma.done.wait [#allocation3], 16  }
  0x13   :  { %237 = vsyncadd [#allocation3], 4294967280  ;;  %v31_v0 = vlaneseq  ;;  %v24_v4 = vld [vmem:[%s314_s1] sm:$0x1]  ;;  %v241_v23 = vmov 683565275  }
  0x14   :  { %v27_v5 = vld [vmem:[#allocation2] sm:$0x1]  ;;  %v242_v25 = vmov 2475754826   ;;  %v243_v27 = vmov 2131351028  }
  0x15   :  { %v32_v1 = vshrl.u32 %v31_v0, 7  ;;  %v29_v6 = vmul.f32 0.0, %v27_v5  ;;  %v244_v29 = vmov 2102212464   ;;  %v245_v31 = vmov 920167782  }
  0x16   :  { %v246_v38 = vmov 1326507024  }
  0x17   :  { %v37_v2 = vsub.s32 0, %v32_v1  ;;  %v33_v3 = vcvt.s32.f32 %v32_v1  ;;  %v30_v8 = vadd.f32 %v29_v6, %v24_v4 }
  0x19   :  { %v38_v7 = vrot.slane %v27_v5, %v37_v2  ;;  %v45_v10 = vrot.slane %v30_v8, %v37_v2 }
  0x1b   :  { %v40_v9 = vmul.f32 %v38_v7, %v33_v3 }
  0x1d   :  { %v280_v11 = vadd.f32 %v45_v10, %v40_v9 }
  0x1f   :  { %v51_v12 = vand.u32 2139095040, %v280_v11  ;;  %v48_v14 = vand.u32 2147483647, %v280_v11  ;;  %vm50_vm7 = vcmp.lt.s32.totalorder %v280_v11, 0  ;;  %vm140_vm12 = vweird.f32 %v280_v11 }
  0x21   :  { %v52_v13 = vshrl.u32 %v51_v12, 23  ;;  %v55_v17 = vand.u32 8388607, %v48_v14  ;;  %vm49_vm8 = vcmp.le.f32.partialorder %v48_v14, 0.7853982 }
  0x23   :  { %v170_v15 = vadd.s32 4294967169, %v52_v13  ;;  %v56_v20 = vor.u32 8388608, %v55_v17 }
  0x25   :  { %v58_v16 = vadd.s32 1, %v170_v15  ;;  %v96_v40 = vshll.u32 %v56_v20, 8 }
  0x27   :  { %vm59_vm0 = vcmp.gt.s32.totalorder %v58_v16, 0 }
  0x28   :  { %v60_v18 = vsel %vm59_vm0, %v58_v16, 0 }
  0x29   :  { %v62_v19 = vand.u32 31, %v60_v18  ;;  %v61_v21 = vshrl.u32 %v60_v18, 5 }
  0x2b   :  { %v63_v22 = vsub.s32 32, %v62_v19  ;;  %v65_v24 = vshll.u32 %v241_v23, %v62_v19  ;;  %v68_v26 = vshll.u32 %v242_v25, %v62_v19  ;;  %v71_v28 = vshll.u32 %v243_v27, %v62_v19 }
  0x2c   :  { %v74_v30 = vshll.u32 %v244_v29, %v62_v19  ;;  %v77_v32 = vshll.u32 %v245_v31, %v62_v19  ;;  %vm80_vm1 = vcmp.lt.s32.totalorder %v61_v21, 1  ;;  %vm83_vm2 = vcmp.lt.s32.totalorder %v61_v21, 4 }
  0x2d   :  { %v64_v33 = vshrl.u32 %v241_v23, %v63_v22  ;;  %v66_v34 = vshrl.u32 %v242_v25, %v63_v22  ;;  %v69_v35 = vshrl.u32 %v243_v27, %v63_v22  ;;  %v72_v36 = vshrl.u32 %v244_v29, %v63_v22 }
  0x2e   :  { %v75_v37 = vshrl.u32 %v245_v31, %v63_v22  ;;  %v78_v39 = vshrl.u32 %v246_v38, %v63_v22  ;;  %vm81_vm3 = vcmp.lt.s32.totalorder %v61_v21, 2  ;;  %vm82_vm4 = vcmp.lt.s32.totalorder %v61_v21, 3 }
  0x2f   :  { %v67_v41 = vor.u32 %v66_v34, %v65_v24  ;;  %v70_v42 = vor.u32 %v69_v35, %v68_v26  ;;  %v73_v43 = vor.u32 %v72_v36, %v71_v28 }
  0x30   :  { %v76_v44 = vor.u32 %v75_v37, %v74_v30  ;;  %v79_v45 = vor.u32 %v78_v39, %v77_v32 }
  0x31   :  { %v84_v46 = vsel %vm80_vm1, %v64_v33, %v67_v41  ;;  %v85_v47 = vsel %vm83_vm2, %v73_v43, 2102212464  ;;  %v88_v48 = vsel %vm80_vm1, %v67_v41, %v70_v42  ;;  %v92_v49 = vsel %vm80_vm1, %v70_v42, %v73_v43 }
  0x32   :  { %v86_v50 = vsel %vm82_vm4, %v70_v42, %v85_v47  ;;  %v89_v51 = vsel %vm83_vm2, %v76_v44, 920167782  ;;  %v93_v52 = vsel %vm83_vm2, %v79_v45, 1326507024 }
  0x33   :  { %v90_v53 = vsel %vm82_vm4, %v73_v43, %v89_v51  ;;  %v94_v54 = vsel %vm82_vm4, %v76_v44, %v93_v52  ;;  %v87_v55 = vsel %vm81_vm3, %v84_v46, %v86_v50 }
  0x34   :  { %v91_v56 = vsel %vm81_vm3, %v88_v48, %v90_v53  ;;  %v95_v57 = vsel %vm81_vm3, %v92_v49, %v94_v54  ;;  %v103_v62 = vmul.u32 %v96_v40, %v87_v55 }
  0x35   :  { %v286_v58 = vmul.u32.u64.low %v96_v40, %v95_v57  ;;  %v287_v59 = vmul.u32.u64.high %v96_v40, %v95_v57, %v286_v58  ;;  %v289_v60 = vmul.u32.u64.low %v96_v40, %v91_v56  ;;  %v290_v61 = vmul.u32.u64.high %v96_v40, %v91_v56, %v289_v60 }
  0x37   :  { %vm105_vm5 = vc.u32 %v287_v59, %v289_v60  ;;  %v106_v63 = vadd.s32 1, %v290_v61  ;;  %v104_v10 = vadd.s32 %v289_v60, %v287_v59 }
  0x39   :  { %v107_v0 = vsel %vm105_vm5, %v106_v63, %v290_v61 }
  0x3a   :  { %v108_v1 = vadd.s32 %v107_v0, %v103_v62 }
  0x3c   :  { %v109_v2 = vadd.s32 536870912, %v108_v1 }
  0x3e   :  { %v110_v3 = vshrl.u32 %v109_v2, 30 }
  0x40   :  { %v111_v4 = vshll.u32 %v110_v3, 30  ;;  %v134_v24 = vsub.s32 4, %v110_v3 }
  0x42   :  { %v112_v5 = vsub.s32 %v108_v1, %v111_v4  ;;  %v135_v27 = vsel %vm50_vm7, %v134_v24, %v110_v3 }
  0x43   :  { %v137_v30 = vsel %vm49_vm8, 0, %v135_v27 }
  0x44   :  { %v114_v6 = vsub.s32 0, %v112_v5  ;;  %v141_v31 = vadd.s32 3, %v137_v30 }
  0x46   :  { %v171_v7 = vmin.u32 %v114_v6, %v112_v5  ;;  %v142_v32 = vand.u32 3, %v141_v31 }
  0x48   :  { %v116_v8 = vclz %v171_v7  ;;  %vm147_vm9 = vcmp.eq.s32.totalorder %v142_v32, 2  ;;  %vm144_vm10 = vcmp.eq.s32.totalorder %v142_v32, 0  ;;  %vm143_vm11 = vcmp.lt.s32.totalorder %v142_v32, 2 }
  0x4a   :  { %v172_v9 = vadd.s32 4294967294, %v116_v8 }
  0x4c   :  { %vm173_vm6 = vcmp.lt.s32.totalorder %v172_v9, 0 }
  0x4d   :  { %v119_v12 = vsel %vm173_vm6, 0, %v172_v9 }
  0x4e   :  { %v120_v13 = vsub.s32 32, %v119_v12  ;;  %v121_v15 = vshll.u32 %v112_v5, %v119_v12  ;;  %v124_v16 = vsub.s32 4294967266, %v119_v12 }
  0x50   :  { %v122_v17 = vshrl.u32 %v104_v10, %v120_v13  ;;  %v125_v18 = vadd.s32 127, %v124_v16 }
  0x52   :  { %v123_v19 = vor.u32 %v122_v17, %v121_v15  ;;  %v126_v20 = vshll.u32 %v125_v18, 23 }
  0x54   :  { %v127_v21 = vor.u32 4788187, %v126_v20  ;;  %v130_v22 = vcvt.s32.f32 %v123_v19 }
  0x56   :  { %v128_v23 = vand.u32 2147483647, %v127_v21 }
  0x58   :  { %v131_v25 = vmul.f32 %v130_v22, %v128_v23 }
  0x5a   :  { %v132_v26 = vxor.u32 2147483648, %v131_v25 }
  0x5c   :  { %v133_v28 = vsel %vm50_vm7, %v132_v26, %v131_v25 }
  0x5d   :  { %v136_v29 = vsel %vm49_vm8, %v280_v11, %v133_v28 }
  0x5e   :  { %188 = vcosq.f32 %v136_v29 }
  0x5f   :  { %190 = vsinq.f32 %v136_v29 }
  0x68   :  { %v189_v33 = vpop.eup %188 }
  0x69   :  { %v191_v34 = vpop.eup %190  ;;  %v148_v35 = vxor.u32 2147483648, %v189_v33 }
  0x6a   :  { %v145_v36 = vxor.u32 2147483648, %v191_v34 }
  0x6b   :  { %v149_v14 = vsel %vm147_vm9, %v148_v35, %v191_v34 }
  0x6c   :  { %v146_v37 = vsel %vm144_vm10, %v189_v33, %v145_v36 }
  0x6d   :  { %v150_v38 = vsel %vm143_vm11, %v146_v37, %v149_v14 }
  0x6e   :  { %v151_v39 = vsel %vm140_vm12, nan, %v150_v38 }
  0x6f   :  { %152 = vst [vmem:[#allocation5] sm:$0xff] %v151_v39 }
  0x70   :  { %157 = vsyncadd [#allocation4], 64  ;;  %s247_s0 = smov [#allocation5]  }
  0x71   :  { %s158_s1 = sshll.u32 %s247_s0, 4  ;;  %s159_s1 = int_to_ptr.vmem [resolvable:$true] %s158_s1 }
  0x72   :  { %s214_s24 = scalar_lea.vmem %s159_s1, 64  ;;  %s218_s25 = scalar_lea.vmem %s159_s1, 128 }
  0x73   :  { %p215_p8 = scmp.ne.s32.totalorder %s159_s1, %s214_s24  ;;  %p219_p9 = scmp.lt.s32.totalorder %s159_s1, %s159_s1 }
  0x74   :  { %p220_p10 = scmp.lt.s32.totalorder %s218_s25, %s214_s24 }
  0x76   :  { %p221_p11 = por %p220_p10, %p219_p9 }
  0x78   :  { %p222_p12 = pnand %p221_p11, %p215_p8 }
  0x7a   :  { %225 = shalt.err (!%p222_p12)
}
  0x7b   :  { %s226_s28 = scalar_lea.hbm %s315_s2, 64 }
  0x7c   :  { %p227_p13 = scmp.ne.s32.totalorder %s315_s2, %s226_s28  ;;  %p230_p0 = scmp.lt.u32.totalorder %s226_s28, %s315_s2 }
  0x7e   :  { %p232_p1 = pnand %p230_p0, %p227_p13 }
  0x80   :  { %235 = shalt.err (!%p232_p1)
}
  0x81   :  { %s248_s5 = smov 64   ;;  %s249_s6 = smov 4  }
  0x82   :  { %164 = dma.vmem_to_hbm [thread:$0]  %s159_s1, 64, %s315_s2, [#allocation4], %s248_s5, %s248_s5, %s249_s6  }
  0x83   :  { %238 = dma.done.wait [#allocation4], 128  }
  0x84   :  { %239 = vsyncadd [#allocation4], 4294967168 }
  0x85   :  { %168 = vsyncpa [#allocation3], 1 }
  0x86   :  { %169 = vsyncpa [#allocation4], 1 }

</bundles_post_ra>
